<compile_context>
chip_gen: v7x
topology: tpu7x:2x2x1
jax: 0.10.0
libtpu: 0.0.40
codegen_flags: <defaults>
</compile_context>

<pallas_src>
import functools

import jax
import jax.numpy as jnp
from jax.experimental import pallas as pl
from jax.experimental.pallas import tpu as pltpu

CLASS_NUM = 50  # forward hard-codes reshape(-1, 50)


def _focal_loss_kernel(x_ref, t_ref, o_ref, *, gamma, tile_s, seq_len):
    s = pl.program_id(1)          # sequence-tile index (accumulation axis)

    # ---- init the resident per-batch accumulator on the first sequence tile ----
    @pl.when(s == 0)
    def _init():
        o_ref[...] = jnp.zeros_like(o_ref)

    # ---- load tile, upcast to f32 (required on v5e), flip to (C, TILE_S) ----
    # The transpose runs on the XLU slot (nearly idle here) and makes every
    # downstream per-row quantity a lane-dense (1, TILE_S) vector.
    x = x_ref[0].astype(jnp.float32)          # (TILE_S, C)
    xt = jnp.transpose(x)                     # (C, TILE_S)   XLU
    ids = t_ref[0]                            # (1, TILE_S)   int32, lane-dense

    # ---- log-softmax over classes (sublane axis) ----
    m = jnp.max(xt, axis=0, keepdims=True)                        # (1, TILE_S)
    xs = xt - m                                                    # (C, TILE_S)
    lse = jnp.log(jnp.sum(jnp.exp(xs), axis=0, keepdims=True))     # (1, TILE_S)

    # one-hot gather of the target logit: compare class iota (sublane index)
    # against the lane-dense target ids, select, reduce over classes.
    cls = jax.lax.broadcasted_iota(jnp.int32, xs.shape, 0)         # (C, TILE_S)
    x_t = jnp.sum(jnp.where(cls == ids, xs, 0.0), axis=0, keepdims=True)

    logp = x_t - lse                          # log p_target, exact   (1, TILE_S)
    p = jnp.exp(logp)
    q = 1.0 - p

    # focal factor: avoid float pow (exp+log on the EUP) for integer gamma.
    g = float(gamma)
    if g == 0.0:
        focal = jnp.ones_like(q)
    elif g == float(int(g)) and 0.0 < g <= 8.0:
        focal = q
        for _ in range(int(g) - 1):
            focal = focal * q
    else:
        focal = q ** g

    loss = -focal * logp                      # (1, TILE_S), lane-dense

    # Ragged last tile: statically elided when S divides evenly.  When present,
    # it MUST be a select (jnp.where), never a multiplicative mask: padded lanes
    # can carry NaN/Inf from undefined block-padding data.
    if seq_len % tile_s != 0:
        col = jax.lax.broadcasted_iota(jnp.int32, loss.shape, 1)   # lane index
        valid = (s * tile_s + col) < seq_len
        loss = jnp.where(valid, loss, 0.0)

    o_ref[...] = o_ref[...] + jnp.sum(loss)


def focal_loss(inputs, targets, weights, *, gamma=2.0, size_average=True,
               tile_s=4096):
    """inputs: any shape with elem count divisible by 50 (row-major, class last);
    targets: (B, S) int; weights: (B,)."""
    C = CLASS_NUM
    x = jnp.asarray(inputs).reshape(-1, C)    # keep native dtype (bf16 OK: half DMA)
    N = x.shape[0]
    B = targets.shape[0]
    assert N % B == 0, "flattened row count must be divisible by the batch dim"
    S = N // B
    x = x.reshape(B, S, C)

    # Targets streamed lane-dense: (B, 1, S) blocked (1, 1, TILE_S).
    t = jnp.asarray(targets).reshape(B, 1, S).astype(jnp.int32)
    w = jnp.asarray(weights).reshape(B).astype(jnp.float32)

    if S <= tile_s:
        TILE_S = S                            # full-extent block: always legal
    else:
        assert tile_s % 128 == 0, "tile_s must be a multiple of 128 when tiling"
        TILE_S = tile_s
    grid_s = pl.cdiv(S, TILE_S)

    kernel = functools.partial(
        _focal_loss_kernel, gamma=float(gamma), tile_s=TILE_S, seq_len=S)

    partial_sums = pl.pallas_call(
        kernel,
        out_shape=jax.ShapeDtypeStruct((B, 1, 1), jnp.float32),
        grid_spec=pltpu.PrefetchScalarGridSpec(
            num_scalar_prefetch=0,
            grid=(B, grid_s),
            in_specs=[
                pl.BlockSpec((1, TILE_S, C), lambda b, s: (b, s, 0)),
                pl.BlockSpec((1, 1, TILE_S), lambda b, s: (b, 0, s)),
            ],
            out_specs=pl.BlockSpec((1, 1, 1), lambda b, s: (b, 0, 0)),
        ),
        compiler_params=pltpu.CompilerParams(
            # batch axis sharded across TensorCores (v7x megacore); sequence
            # axis is the accumulation axis -> must stay "arbitrary".
            dimension_semantics=("parallel", "arbitrary"),
            vmem_limit_bytes=64 * 1024 * 1024,
        ),
    )(x, t)

    # Per-batch weight applied once here (not per grid step), then reduce.
    total = jnp.sum(partial_sums.reshape(B) * w)
    if size_average:
        return total / jnp.float32(N)
    return total


if __name__ == "__main__":
    key = jax.random.PRNGKey(0)
    k1, k2, k3, k4, k5, k6 = jax.random.split(key, 6)

    C = CLASS_NUM

    def reference(inputs, targets, weights, gamma=2.0, size_average=True):
        x = jnp.asarray(inputs).reshape(-1, C).astype(jnp.float32)
        logp = jax.nn.log_softmax(x, axis=1)
        lp_t = jnp.take_along_axis(
            logp, jnp.asarray(targets).reshape(-1, 1).astype(jnp.int32), axis=1)
        p_t = jnp.exp(lp_t)
        loss = -((1.0 - p_t) ** gamma) * lp_t
        loss = loss.reshape(targets.shape[0], -1) * \
            jnp.asarray(weights).reshape(-1, 1).astype(jnp.float32)
        return loss.mean() if size_average else loss.sum()

    # Case 1: nominal small shape (single full-extent sequence tile per batch row).
    B, S = 2, 8
    inputs = jax.random.normal(k1, (B, S, C), dtype=jnp.float32)
    targets = jax.random.randint(k2, (B, S), 0, C, dtype=jnp.int32)
    weights = jax.random.uniform(k3, (B,), dtype=jnp.float32)

    loss = focal_loss(inputs, targets, weights, gamma=2.0, size_average=True)
    jax.block_until_ready(loss)
    ref = reference(inputs, targets, weights)
    assert jnp.allclose(loss, ref, rtol=1e-5, atol=1e-6), (loss, ref)

    loss_sum = focal_loss(inputs, targets, weights, gamma=2.0, size_average=False)
    jax.block_until_ready(loss_sum)
    ref_sum = reference(inputs, targets, weights, size_average=False)
    assert jnp.allclose(loss_sum, ref_sum, rtol=1e-5, atol=1e-6), (loss_sum, ref_sum)

    # Case 2: multi-tile grid (TILE_S = 128) with a ragged last tile
    # (exercises the in-kernel select mask and the accumulation path).
    B2, S2 = 2, 200
    inputs2 = jax.random.normal(k4, (B2, S2, C), dtype=jnp.float32)
    targets2 = jax.random.randint(k5, (B2, S2), 0, C, dtype=jnp.int32)
    weights2 = jax.random.uniform(k6, (B2,), dtype=jnp.float32)

    loss2 = focal_loss(inputs2, targets2, weights2, gamma=2.0,
                       size_average=True, tile_s=128)
    jax.block_until_ready(loss2)
    ref2 = reference(inputs2, targets2, weights2)
    assert jnp.allclose(loss2, ref2, rtol=1e-5, atol=1e-6), (loss2, ref2)

    print("KERNEL_OK")
</pallas_src>

<mosaic_0001>
module attributes {stable_mosaic.version = 11 : i64} {
  func.func @_focal_loss_kernel(%arg0: i32, %arg1: i32, %arg2: memref<1x8x50xf32, #tpu.memory_space<vmem>>, %arg3: memref<1x1x8xi32, #tpu.memory_space<vmem>>, %arg4: memref<1x1x1xf32, #tpu.memory_space<vmem>>) attributes {dimension_semantics = [#tpu.dimension_semantics<parallel>, #tpu.dimension_semantics<arbitrary>], iteration_bounds = array<i64: 2, 1>, scalar_prefetch = 0 : i64, scratch_operands = 0 : i64, tpu.core_type = #tpu.core_type<tc>, window_params = [{transform_indices = @transform_0, window_bounds = array<i64: 1, 8, 50>}, {transform_indices = @transform_1, window_bounds = array<i64: 1, 1, 8>}, {transform_indices = @transform_2, window_bounds = array<i64: 1, 1, 1>}]} {
    %c0_i32 = arith.constant 0 : i32
    %0 = arith.cmpi eq, %arg1, %c0_i32 : i32
    %1 = arith.extui %0 : i1 to i32
    %c0_i32_0 = arith.constant 0 : i32
    %2 = arith.cmpi ne, %1, %c0_i32_0 : i32
    scf.if %2 {
      %cst_18 = arith.constant 0.000000e+00 : f32
      %39 = vector.broadcast %cst_18 : f32 to vector<1x1x1xf32>
      %c0_19 = arith.constant 0 : index
      %c0_20 = arith.constant 0 : index
      %c0_21 = arith.constant 0 : index
      %40 = vector.load %arg4[%c0_19, %c0_20, %c0_21] : memref<1x1x1xf32, #tpu.memory_space<vmem>>, vector<1x1x1xf32>
      tpu.vector_store %arg4[%c0_19, %c0_20, %c0_21], %39 {strides = array<i32>} : memref<1x1x1xf32, #tpu.memory_space<vmem>>, vector<1x1x1xf32>,
    } else {
    }
    %c0 = arith.constant 0 : index
    %c0_1 = arith.constant 0 : index
    %c0_2 = arith.constant 0 : index
    %3 = vector.load %arg2[%c0, %c0_1, %c0_2] : memref<1x8x50xf32, #tpu.memory_space<vmem>>, vector<1x8x50xf32>
    %4 = vector.shape_cast %3 : vector<1x8x50xf32> to vector<8x50xf32>
    %5 = tpu.transpose %4, [1, 0] : vector<8x50xf32> -> vector<50x8xf32>
    %c0_3 = arith.constant 0 : index
    %c0_4 = arith.constant 0 : index
    %c0_5 = arith.constant 0 : index
    %6 = vector.load %arg3[%c0_3, %c0_4, %c0_5] : memref<1x1x8xi32, #tpu.memory_space<vmem>>, vector<1x1x8xi32>
    %7 = vector.shape_cast %6 : vector<1x1x8xi32> to vector<1x8xi32>
    %cst = arith.constant dense<0xFF800000> : vector<8xf32>
    %8 = vector.multi_reduction <maximumf>, %5, %cst [0] : vector<50x8xf32> to vector<8xf32>
    %9 = vector.shape_cast %8 : vector<8xf32> to vector<1x8xf32>
    %10 = vector.broadcast %9 : vector<1x8xf32> to vector<50x8xf32>
    %11 = arith.subf %5, %10 : vector<50x8xf32>
    %12 = math.exp %11 : vector<50x8xf32>
    %cst_6 = arith.constant dense<0.000000e+00> : vector<8xf32>
    %13 = vector.multi_reduction <add>, %12, %cst_6 [0] : vector<50x8xf32> to vector<8xf32>
    %14 = vector.shape_cast %13 : vector<8xf32> to vector<1x8xf32>
    %15 = math.log %14 : vector<1x8xf32>
    %16 = tpu.iota {dimensions = array<i32: 0>} : vector<50x8xi32>
    %17 = vector.broadcast %7 : vector<1x8xi32> to vector<50x8xi32>
    %18 = arith.cmpi eq, %16, %17 : vector<50x8xi32>
    %cst_7 = arith.constant 0.000000e+00 : f32
    %19 = vector.broadcast %cst_7 : f32 to vector<50x8xf32>
    %20 = arith.select %18, %11, %19 : vector<50x8xi1>, vector<50x8xf32>
    %cst_8 = arith.constant dense<0.000000e+00> : vector<8xf32>
    %21 = vector.multi_reduction <add>, %20, %cst_8 [0] : vector<50x8xf32> to vector<8xf32>
    %22 = vector.shape_cast %21 : vector<8xf32> to vector<1x8xf32>
    %23 = arith.subf %22, %15 : vector<1x8xf32>
    %24 = math.exp %23 : vector<1x8xf32>
    %cst_9 = arith.constant 1.000000e+00 : f32
    %25 = vector.broadcast %cst_9 : f32 to vector<1x8xf32>
    %26 = arith.subf %25, %24 : vector<1x8xf32>
    %27 = arith.mulf %26, %26 : vector<1x8xf32>
    %cst_10 = arith.constant 0.000000e+00 : f32
    %28 = vector.broadcast %cst_10 : f32 to vector<1x8xf32>
    %29 = arith.subf %28, %27 : vector<1x8xf32>
    %30 = arith.mulf %29, %23 : vector<1x8xf32>
    %c0_11 = arith.constant 0 : index
    %c0_12 = arith.constant 0 : index
    %c0_13 = arith.constant 0 : index
    %31 = vector.load %arg4[%c0_11, %c0_12, %c0_13] : memref<1x1x1xf32, #tpu.memory_space<vmem>>, vector<1x1x1xf32>
    %32 = vector.shape_cast %30 : vector<1x8xf32> to vector<1x1x8xf32>
    %cst_14 = arith.constant dense<0.000000e+00> : vector<1xf32>
    %33 = vector.multi_reduction <add>, %32, %cst_14 [1, 2] : vector<1x1x8xf32> to vector<1xf32>
    %34 = vector.shape_cast %33 : vector<1xf32> to vector<1x1x1xf32>
    %35 = vector.extract %34[0, 0, 0] : f32 from vector<1x1x1xf32>
    %36 = vector.broadcast %35 : f32 to vector<1x1x1xf32>
    %37 = arith.addf %31, %36 : vector<1x1x1xf32>
    %c0_15 = arith.constant 0 : index
    %c0_16 = arith.constant 0 : index
    %c0_17 = arith.constant 0 : index
    %38 = vector.load %arg4[%c0_15, %c0_16, %c0_17] : memref<1x1x1xf32, #tpu.memory_space<vmem>>, vector<1x1x1xf32>
    tpu.vector_store %arg4[%c0_15, %c0_16, %c0_17], %37 {strides = array<i32>} : memref<1x1x1xf32, #tpu.memory_space<vmem>>, vector<1x1x1xf32>,
    return
  }
  func.func @transform_0(%arg0: i32, %arg1: i32) -> (i32, i32, i32) {
    %c0_i32 = arith.constant 0 : i32
    %c0_i32_0 = arith.constant 0 : i32
    return %arg0, %arg1, %c0_i32 : i32, i32, i32
  }
  func.func @transform_1(%arg0: i32, %arg1: i32) -> (i32, i32, i32) {
    %c0_i32 = arith.constant 0 : i32
    %c0_i32_0 = arith.constant 0 : i32
    return %arg0, %c0_i32, %arg1 : i32, i32, i32
  }
  func.func @transform_2(%arg0: i32, %arg1: i32) -> (i32, i32, i32) {
    %c0_i32 = arith.constant 0 : i32
    %c0_i32_0 = arith.constant 0 : i32
    %c0_i32_1 = arith.constant 0 : i32
    return %arg0, %c0_i32, %c0_i32_0 : i32, i32, i32
  }
}

</mosaic_0001>

<bundles_post_ra>
// kernel: tpu_custom_call.1
= control target key start
LH: loop header
LB: loop body
LE: loop exit
PB: predicated region body
PF: predicated region fallthrough
CT: control target
= control target key end

     0   :  { %7 = vsyncpa [#allocation3], 0  ;;  %s1008_s0 = inlined_call_operand.hbm [shape: f32[2,8,50], index: 0, kind: input, shape index: {}]   ;;  %s1009_s1 = inlined_call_operand.hbm [shape: s32[2,1,8], index: 1, kind: input, shape index: {}]   ;;  %s1010_s2 = inlined_call_operand.hbm [shape: f32[2,1,1], index: 2, kind: output, shape index: {}]  }
   0x1   :  { %9 = vsyncpa [#allocation3 + $0x1], 0 }
   0x2   :  { %10 = vsyncpa [#allocation6], 0 }
   0x3   :  { %12 = vsyncpa [#allocation6 + $0x1], 0 }
   0x4   :  { %13 = vsyncpa [#allocation4], 0 }
   0x5   :  { %15 = vsyncpa [#allocation4 + $0x1], 0  ;;  %s758_s9 = smov 0   ;;  %s760_s10 = smov 0  }
   0x6   :  { %s762_s11 = smov 0   ;;  %s764_s12 = smov 0  }
   0x7   :  { %s766_s13 = smov 0   ;;  %s768_s14 = smov 0  }
   0x8 LB: > { %s490_s15 = sadd.s32 4294967295, %s737_s14   ;;  %s491_s16 = sadd.s32 4294967294, %s737_s14   ;;  %s737_s14 = sphi %s768_s14, %s21_s14   ;;  %s733_s13 = sphi %s766_s13, %s1030_s13   ;;  %s729_s12 = sphi %s764_s12, %s1029_s12   ;;  %s725_s11 = sphi %s762_s11, %s1028_s11   ;;  %s721_s10 = sphi %s760_s10, %s1027_s10   ;;  %s717_s9 = sphi %s758_s9, %s1026_s9  }
   0x9   : > { %s33_s17 = sadd.s32 1, %s733_s13  ;;  %s42_s18 = sadd.s32 1, %s725_s11 }
   0xa   : > { %p35_p0 = scmp.ge.s32.totalorder %s33_s17, 2  ;;  %p49_p1 = scmp.ne.s32.totalorder %s725_s11, %s721_s10 }
   0xb   : > { %p50_p2 = scmp.eq.s32.totalorder %s737_s14, 0  ;;  %p55_p3 = scmp.ne.s32.totalorder %s721_s10, %s717_s9 }
   0xc   : > { %s1032_s17 = smov (%p35_p0, %s33_s17), 0  ;;  %p56_p5 = scmp.eq.s32.totalorder %s490_s15, 0 }
   0xd   : > { %p799_p4 = por %p50_p2, %p49_p1  ;;  %s37_s20 = ssub.s32 %s733_s13, %s1032_s17 }
   0xe   : > { %p107_p6 = scmp.eq.s32.totalorder %s490_s15, 1  ;;  %p40_p7 = scmp.eq.s32.totalorder %s37_s20, 0 }
   0xf   : > { %p805_p8 = por %p56_p5, %p55_p3  ;;  %p113_p10 = scmp.eq.s32.totalorder %s491_s16, 1 }
  0x10   : > { %p809_p9 = por %p107_p6, %p49_p1  ;;  %p522_p13 = scmp.lt.s32.totalorder %s737_s14, 2 }
  0x11   : > { %s1014_s21 = scalar_select %p805_p8, 1, 0 }
  0x12   : > { %s1015_s22 = scalar_select %p809_p9, 1, 0 }
  0x13   : > { %s814_s23 = scalar_select %p40_p7, %s725_s11, %s42_s18  }
  0x14   : > { %p816_p11 = por %p113_p10, %p55_p3  ;;  %s823_s25 = sand.u32 1, %s725_s11  }
  0x15   : > { %s494_s26 = sshll.u32 %s823_s25, 3  ;;  %s495_s27 = sshll.u32 %s733_s13, 7 }
  0x16   : > { %s1016_s24 = scalar_select %p816_p11, 1, 0 }
  0x17   : > { %s830_s30 = scalar_lea.hbm %s1008_s0, %s495_s27  ;;  %s137_s3 = scalar_lea.vmem [#allocation2], %s494_s26 }
  0x18   : > { %s145_s4 = sshll.u32 %s137_s3, 4  ;;  %p836_p0 = pnand %p522_p13, %p799_p4  ;;  %s832_s4 = int_to_ptr.vmem [resolvable:$true] %s145_s4 }
  0x19   : > { %s134_s6 = scalar_lea.sflag [#allocation3], %s823_s25  ;;  %s591_s7 = scalar_lea.hbm %s830_s30, 128 }
  0x1a   : > { %p592_p3 = scmp.ne.s32.totalorder %s830_s30, %s591_s7  ;;  %p593_p5 = pneg %p836_p0 }
  0x1b   : > { %s596_s16 = scalar_lea.hbm %s1008_s0, 256  ;;  %p597_p4 = scmp.lt.u32.totalorder %s830_s30, %s1008_s0 }
  0x1c   : > { %p594_p6 = pnand %p593_p5, %p592_p3  ;;  %p598_p10 = scmp.lt.u32.totalorder %s596_s16, %s591_s7 }
  0x1d   : > { %p600_p12 = scmp.lt.u32.totalorder %s591_s7, %s830_s30 }
  0x1e   : > { %p595_p7 = pneg %p594_p6  ;;  %p599_p13 = por %p598_p10, %p597_p4 }
  0x20   : > { %p601_p1 = por %p600_p12, %p599_p13 }
  0x22   : > { %p602_p2 = pnand %p601_p1, %p595_p7 }
  0x24   : > { %605 = shalt.err (!%p602_p2)
}
  0x25   : > { %s606_s20 = scalar_lea.vmem %s832_s4, 128  ;;  %s739_s26 = smov [#allocation2]  }
  0x26   : > { %p607_p3 = scmp.ne.s32.totalorder %s832_s4, %s606_s20  ;;  %s611_s27 = sshll.u32 %s739_s26, 4  ;;  %s612_s27 = int_to_ptr.vmem [resolvable:$false] %s611_s27 }
  0x27   : > { %s613_s28 = scalar_lea.vmem %s612_s27, 256  ;;  %p614_p9 = scmp.lt.s32.totalorder %s832_s4, %s612_s27 }
  0x28   : > { %p609_p6 = pnand %p607_p3, %p593_p5  ;;  %p615_p4 = scmp.lt.s32.totalorder %s613_s28, %s606_s20 }
  0x2a   : > { %p610_p11 = pneg %p609_p6  ;;  %p616_p10 = por %p615_p4, %p614_p9 }
  0x2c   : > { %p617_p12 = pnand %p616_p10, %p610_p11 }
  0x2e   : > { %620 = shalt.err (!%p617_p12)
}
  0x2f   : > { %514 = dma.hbm_to_vmem [thread:$0]  (!%p836_p0), %s830_s30, 128, %s832_s4, %s134_s6  }
  0x30   : > { %p1018_p1 = scmp.lt.s32.totalorder %s737_s14, 3  ;;  %p1019_p2 = scmp.ge.s32.totalorder %s737_s14, 1 }
  0x31   : > { %s496_s3 = sshll.u32 %s733_s13, 4  ;;  %s155_s7 = scalar_lea.vmem [#allocation5], %s823_s25 }
  0x32   : > { %p872_p7 = pnand %p1019_p2, %p1018_p1  ;;  %s163_s8 = sshll.u32 %s155_s7, 4  ;;  %s164_s8 = int_to_ptr.vmem [resolvable:$true] %s163_s8 }
  0x33   : > { %s881_s18 = scalar_lea.hbm %s1009_s1, %s496_s3  ;;  %s153_s30 = scalar_lea.sflag [#allocation6], %s823_s25 }
  0x34   : > { %s1020_s29 = scalar_select %p872_p7, 1, 0 }
  0x35   : > { %s621_s4 = scalar_lea.hbm %s881_s18, 16  ;;  %s626_s20 = scalar_lea.hbm %s1009_s1, 32 }
  0x36   : > { %p622_p9 = scmp.ne.s32.totalorder %s881_s18, %s621_s4  ;;  %p627_p3 = scmp.lt.u32.totalorder %s881_s18, %s1009_s1 }
  0x37   : > { %p628_p6 = scmp.lt.u32.totalorder %s626_s20, %s621_s4  ;;  %p630_p10 = scmp.lt.u32.totalorder %s621_s4, %s881_s18 }
  0x38   : > { %p624_p11 = pnand %p622_p9, %p593_p5 }
  0x39   : > { %p629_p4 = por %p628_p6, %p627_p3 }
  0x3a   : > { %p625_p13 = pneg %p624_p11 }
  0x3b   : > { %p631_p12 = por %p630_p10, %p629_p4 }
  0x3d   : > { %p632_p1 = pnand %p631_p12, %p625_p13 }
  0x3f   : > { %635 = shalt.err (!%p632_p1)
}
  0x40   : > { %s636_s25 = scalar_lea.vmem %s164_s8, 16  ;;  %s740_s28 = smov [#allocation5]  }
  0x41   : > { %p637_p2 = scmp.ne.s32.totalorder %s164_s8, %s636_s25  ;;  %s641_s3 = sshll.u32 %s740_s28, 4  ;;  %s642_s3 = int_to_ptr.vmem [resolvable:$false] %s641_s3 }
  0x42   : > { %s643_s7 = scalar_lea.vmem %s642_s3, 32  ;;  %p644_p8 = scmp.lt.s32.totalorder %s164_s8, %s642_s3 }
  0x43   : > { %p639_p9 = pnand %p637_p2, %p593_p5  ;;  %p645_p7 = scmp.lt.s32.totalorder %s643_s7, %s636_s25 }
  0x45   : > { %p640_p11 = pneg %p639_p9  ;;  %p646_p3 = por %p645_p7, %p644_p8 }
  0x47   : > { %p647_p6 = pnand %p646_p3, %p640_p11 }
  0x49   : > { %650 = shalt.err (!%p647_p6)
}
  0x4a   : > { %517 = dma.hbm_to_vmem [thread:$0]  (!%p836_p0), %s881_s18, 16, %s164_s8, %s153_s30  }
  0x4b   : > { %p1021_p13 = scmp.ne.s32.totalorder %s1020_s29, 0 }
  0x4c   : > { %s906_s15 = sand.u32 (!%p1021_p13), 1, %s721_s10   ;;  %p1022_p5 = scmp.ne.s32.totalorder (!%p1021_p13), %s1014_s21, 0 }
  0x4d   : > { %172 = sbr.rel (%p1021_p13) target bundleno = 559 (0x22f), region = 28  ;;  %s498_s16 = sshll.u32 (!%p1021_p13), %s906_s15, 3 }
  0x4e   : > { %s175_s4 = scalar_lea.sflag (!%p1021_p13), [#allocation3], %s906_s15  ;;  %s178_s6 = scalar_lea.vmem (!%p1021_p13), [#allocation2], %s498_s16 }
  0x54   : > { %704 = dma.done.wait (%p1022_p5), %s175_s4, 128  }
  0x55   : > { %706 = vsyncadd (%p1022_p5), %s175_s4, 4294967168  ;;  %s184_s5 = scalar_lea.sflag [#allocation6], %s906_s15  ;;  %s186_s29 = scalar_lea.vmem [#allocation5], %s906_s15 }
  0x56   : > { %708 = dma.done.wait (%p1022_p5), %s184_s5, 16  }
  0x57   : > { %710 = vsyncadd (%p1022_p5), %s184_s5, 4294967280  ;;  %v216_v0 = vld [vmem:[%s178_s6] sm:$0xff]  ;;  %vm250_vm0 = vcmask 64512   ;;  %vm259_vm1 = vcmask 58368   ;;  %v313_v22 = vlaneseq  ;;  %vm366_vm9 = vcmask 57344   ;;  %s209_s21 = scalar_lea.vmem [#allocation7], %s906_s15 }
  0x58   : > { %217 = vxpose.xlu0.b32.start.end [1/1] (short) (narrow) %v216_v0, 56  ;;  %v929_v29 = vld [vmem:[%s186_s29] ss:$0 sm:$0xff]  ;;  %vm214_vm10 = vcmask 0   ;;  %s500_s8 = sshll.u32 %s729_s12, 4  ;;  %s394_s18 = sshll.u32 %s209_s21, 4  ;;  %s960_s18 = int_to_ptr.vmem [resolvable:$true] %s394_s18 }
  0x59   : > { %v314_v25 = vshrl.u32 %v313_v22, 7  ;;  %s958_s26 = scalar_lea.hbm %s1010_s2, %s500_s8  ;;  %s382_s27 = scalar_lea.sflag [#allocation4], %s906_s15 }
  0x5a   : > { %s651_s25 = scalar_lea.vmem %s960_s18, 16  ;;  %p1023_p0 = scmp.ne.s32.totalorder %s1015_s22, 0 }
  0x5b   : > { %v315_v28 = vadd.s32 8, %v314_v25  ;;  %v316_v35 = vadd.s32 16, %v314_v25  ;;  %vm325_vm2 = vcmp.eq.s32.totalorder %v314_v25, %v929_v29  ;;  %v317_v42 = vadd.s32 24, %v314_v25  ;;  %p652_p8 = scmp.ne.s32.totalorder %s960_s18, %s651_s25  ;;  %s742_s12 = smov [#allocation7]  }
  0x5c   : > { %v318_v52 = vadd.s32 32, %v314_v25  ;;  %v319_v57 = vadd.s32 40, %v314_v25  ;;  %s655_s28 = sshll.u32 %s742_s12, 4  ;;  %s656_s28 = int_to_ptr.vmem [resolvable:$false] %s655_s28 }
  0x5d   : > { %vm326_vm3 = vcmp.eq.s32.totalorder %v315_v28, %v929_v29  ;;  %vm327_vm4 = vcmp.eq.s32.totalorder %v316_v35, %v929_v29  ;;  %vm328_vm5 = vcmp.eq.s32.totalorder %v317_v42, %v929_v29  ;;  %p653_p7 = pnand %p652_p8, %p1023_p0  ;;  %s657_s3 = scalar_lea.vmem %s656_s28, 32 }
  0x5e   : > { %vm329_vm6 = vcmp.eq.s32.totalorder %v318_v52, %v929_v29  ;;  %vm330_vm7 = vcmp.eq.s32.totalorder %v319_v57, %v929_v29  ;;  %p658_p10 = scmp.lt.s32.totalorder %s960_s18, %s656_s28  ;;  %p659_p12 = scmp.lt.s32.totalorder %s657_s3, %s651_s25 }
  0x5f   : > { %p654_p4 = pneg %p653_p7 }
  0x60   : > { %p660_p1 = por %p659_p12, %p658_p10 }
  0x62   : > { %p661_p2 = pnand %p660_p1, %p654_p4 }
  0xd8   : > { %v233_v1 = vpop.trf.xlu0 }
  0xd9   : > { %v251_v12 = vsel %vm250_vm0, %v233_v1, -inf }
  0xdc   : > { %v234_v2 = vpop.trf.xlu0 }
  0xdd   : > { %v252_v8 = vsel %vm250_vm0, %v234_v2, -inf }
  0xe0   : > { %v235_v3 = vpop.trf.xlu0 }
  0xe1   : > { %v253_v13 = vsel %vm250_vm0, %v235_v3, -inf }
  0xe4   : > { %v236_v4 = vpop.trf.xlu0 }
  0xe5   : > { %v254_v17 = vsel %vm250_vm0, %v236_v4, -inf }
  0xe8   : > { %v237_v5 = vpop.trf.xlu0 }
  0xe9   : > { %v255_v9 = vsel %vm250_vm0, %v237_v5, -inf }
  0xea   : > { %v256_v15 = vmax.f32 %v251_v12, %v255_v9 }
  0xec   : > { %v238_v6 = vpop.trf.xlu0 }
  0xed   : > { %v257_v7 = vsel %vm250_vm0, %v238_v6, -inf }
  0xee   : > { %v258_v10 = vmax.f32 %v252_v8, %v257_v7 }
  0xf0   : > { %v239_v11 = vpop.trf.xlu0  ;;  %v262_v18 = vmax.f32 %v256_v15, %v258_v10 }
  0xf1   : > { %v260_v14 = vsel %vm259_vm1, %v239_v11, -inf }
  0xf2   : > { %v261_v16 = vmax.f32 %v253_v13, %v260_v14 }
  0xf4   : > { %v263_v19 = vmax.f32 %v261_v16, %v254_v17 }
  0xf6   : > { %v264_v20 = vmax.f32 %v262_v18, %v263_v19 }
  0xf8   : > { %v265_v21 = vrot.slane %v264_v20, 4 }
  0xfa   : > { %v266_v23 = vmax.f32 %v264_v20, %v265_v21 }
  0xfc   : > { %v267_v24 = vrot.slane %v266_v23, 2 }
  0xfe   : > { %v268_v26 = vmax.f32 %v266_v23, %v267_v24 }
 0x100   : > { %v269_v27 = vrot.slane %v268_v26, 1 }
 0x102   : > { %v270_v30 = vmax.f32 %v268_v26, %v269_v27 }
 0x104   : > { %v271_v31 = vsub.f32 %v233_v1, %v270_v30  ;;  %v272_v32 = vsub.f32 %v234_v2, %v270_v30  ;;  %v273_v33 = vsub.f32 %v235_v3, %v270_v30  ;;  %v274_v34 = vsub.f32 %v236_v4, %v270_v30 }
 0x105   : > { %v275_v36 = vsub.f32 %v237_v5, %v270_v30  ;;  %v276_v40 = vsub.f32 %v238_v6, %v270_v30  ;;  %v277_v45 = vsub.f32 %v239_v11, %v270_v30  ;;  %v320_v3 = vadd.s32 48, %v314_v25 }
 0x106   : > { %v278_v37 = vmul.f32 1.442695, %v271_v31  ;;  %v280_v38 = vmul.f32 1.442695, %v272_v32  ;;  %v282_v39 = vmul.f32 1.442695, %v273_v33 }
 0x107   : > { %v284_v41 = vmul.f32 1.442695, %v274_v34  ;;  %v332_v43 = vsel %vm325_vm2, %v271_v31, 0.0  ;;  %v333_v44 = vsel %vm326_vm3, %v272_v32, 0.0  ;;  %v286_v46 = vmul.f32 1.442695, %v275_v36 }
 0x108   : > { %573 = vpow2.f32 %v278_v37  ;;  %v339_v47 = vsel %vm250_vm0, %v332_v43, 0.0  ;;  %v288_v48 = vmul.f32 1.442695, %v276_v40  ;;  %v340_v49 = vsel %vm250_vm0, %v333_v44, 0.0 }
 0x109   : > { %575 = vpow2.f32 %v280_v38  ;;  %v334_v50 = vsel %vm327_vm4, %v273_v33, 0.0  ;;  %v341_v51 = vadd.f32 %v340_v49, %v339_v47  ;;  %v290_v53 = vmul.f32 1.442695, %v277_v45 }
 0x10a   : > { %577 = vpow2.f32 %v282_v39  ;;  %v342_v54 = vsel %vm250_vm0, %v334_v50, 0.0  ;;  %v335_v55 = vsel %vm328_vm5, %v274_v34, 0.0  ;;  %v336_v0 = vsel %vm329_vm6, %v275_v36, 0.0 }
 0x10b   : > { %579 = vpow2.f32 %v284_v41  ;;  %v343_v56 = vadd.f32 %v342_v54, %v341_v51  ;;  %v344_v61 = vsel %vm250_vm0, %v335_v55, 0.0  ;;  %v346_v8 = vsel %vm250_vm0, %v336_v0, 0.0 }
 0x10c   : > { %581 = vpow2.f32 %v286_v46  ;;  %v337_v10 = vsel %vm330_vm7, %v276_v40, 0.0  ;;  %vm331_vm8 = vcmp.eq.s32.totalorder %v320_v3, %v929_v29 }
 0x10d   : > { %583 = vpow2.f32 %v288_v48  ;;  %v345_v1 = vadd.f32 %v344_v61, %v343_v56  ;;  %v348_v17 = vsel %vm250_vm0, %v337_v10, 0.0  ;;  %v338_v19 = vsel %vm331_vm8, %v277_v45, 0.0 }
 0x10e   : > { %585 = vpow2.f32 %v290_v53  ;;  %v350_v24 = vsel %vm259_vm1, %v338_v19, 0.0  ;;  %v741_v48 = vmov 0.0  }
 0x10f   : > { %v347_v11 = vadd.f32 %v346_v8, %v345_v1  ;;  %215 = vst.msk [vmem:[%s209_s21] sm:$0x1] %vm214_vm10, %v741_v48 }
 0x111   : > { %v349_v20 = vadd.f32 %v348_v17, %v347_v11 }
 0x112   : > { %v574_v58 = vpop.eup %573 }
 0x113   : > { %v576_v59 = vpop.eup %575  ;;  %v292_v60 = vsel %vm250_vm0, %v574_v58, 0.0  ;;  %v351_v25 = vadd.f32 %v350_v24, %v349_v20 }
 0x114   : > { %v578_v62 = vpop.eup %577  ;;  %v293_v63 = vsel %vm250_vm0, %v576_v59, 0.0 }
 0x115   : > { %v580_v2 = vpop.eup %579  ;;  %v294_v4 = vadd.f32 %v293_v63, %v292_v60  ;;  %v295_v5 = vsel %vm250_vm0, %v578_v62, 0.0  ;;  %v352_v28 = vrot.slane %v351_v25, 4 }
 0x116   : > { %v582_v6 = vpop.eup %581  ;;  %v297_v9 = vsel %vm250_vm0, %v580_v2, 0.0  ;;  %v365_v56 = vld [vmem:[%s209_s21] sm:$0x1] }
 0x117   : > { %v296_v7 = vadd.f32 %v295_v5, %v294_v4  ;;  %v584_v12 = vpop.eup %583  ;;  %v299_v14 = vsel %vm250_vm0, %v582_v6, 0.0  ;;  %v353_v31 = vadd.f32 %v352_v28, %v351_v25 }
 0x118   : > { %v586_v15 = vpop.eup %585  ;;  %v301_v18 = vsel %vm250_vm0, %v584_v12, 0.0 }
 0x119   : > { %v298_v13 = vadd.f32 %v297_v9, %v296_v7  ;;  %v303_v22 = vsel %vm259_vm1, %v586_v15, 0.0  ;;  %v354_v34 = vrot.slane %v353_v31, 2 }
 0x11b   : > { %v300_v16 = vadd.f32 %v299_v14, %v298_v13  ;;  %v355_v35 = vadd.f32 %v354_v34, %v353_v31 }
 0x11d   : > { %v302_v21 = vadd.f32 %v301_v18, %v300_v16  ;;  %v356_v36 = vrot.slane %v355_v35, 1 }
 0x11f   : > { %v304_v23 = vadd.f32 %v303_v22, %v302_v21  ;;  %v357_v39 = vadd.f32 %v356_v36, %v355_v35 }
 0x121   : > { %v305_v26 = vrot.slane %v304_v23, 4 }
 0x123   : > { %v306_v27 = vadd.f32 %v305_v26, %v304_v23 }
 0x125   : > { %v307_v29 = vrot.slane %v306_v27, 2 }
 0x127   : > { %v308_v30 = vadd.f32 %v307_v29, %v306_v27 }
 0x129   : > { %v309_v32 = vrot.slane %v308_v30, 1 }
 0x12b   : > { %v310_v33 = vadd.f32 %v309_v32, %v308_v30 }
 0x12d   : > { %587 = vlog2.f32 %v310_v33 }
 0x137   : > { %v588_v37 = vpop.eup %587 }
 0x138   : > { %v312_v38 = vmul.f32 0.6931472, %v588_v37 }
 0x13a   : > { %v358_v40 = vsub.f32 %v357_v39, %v312_v38 }
 0x13c   : > { %v359_v41 = vmul.f32 1.442695, %v358_v40 }
 0x13e   : > { %589 = vpow2.f32 %v359_v41 }
 0x148   : > { %v590_v42 = vpop.eup %589 }
 0x149   : > { %v361_v43 = vsub.f32 1.0, %v590_v42 }
 0x14b   : > { %v362_v44 = vmul.f32 %v361_v43, %v361_v43 }
 0x14d   : > { %v363_v45 = vsub.f32 0.0, %v362_v44 }
 0x14f   : > { %v364_v46 = vmul.f32 %v363_v45, %v358_v40 }
 0x151   : > { %v367_v47 = vsel %vm366_vm9, %v364_v46, 0.0 }
 0x152   : > { %368 = vadd.xlane.f32.xlu0 %v367_v47 }
 0x1df   : > { %v369_v49 = vpop.xlane.xlu0 %368 }
 0x1e0   : > { %v370_v50 = vrot.slane %v369_v49, 4 }
 0x1e2   : > { %v371_v51 = vadd.f32 %v370_v50, %v369_v49 }
 0x1e4   : > { %v372_v52 = vrot.slane %v371_v51, 2 }
 0x1e6   : > { %v373_v53 = vadd.f32 %v372_v52, %v371_v51 }
 0x1e8   : > { %v374_v54 = vrot.slane %v373_v53, 1 }
 0x1ea   : > { %v375_v55 = vadd.f32 %v374_v54, %v373_v53 }
 0x1ec   : > { %503 = vpush %v375_v55 }
 0x21d   : > { %s504_s30 = spop %503 }
 0x21e   : > { %v377_v57 = vstv %s504_s30 }
 0x21f   : > { %v378_v58 = vadd.f32 %v377_v57, %v365_v56 }
 0x221   : > { %380 = vst.msk [vmem:[%s209_s21] sm:$0x1] %vm214_vm10, %v378_v58 }
 0x222   : > { %664 = shalt.err (!%p661_p2)
}
 0x223   : > { %s665_s7 = scalar_lea.hbm %s958_s26, 16  ;;  %s669_s4 = scalar_lea.hbm %s1010_s2, 32 }
 0x224   : > { %p666_p9 = scmp.ne.s32.totalorder %s958_s26, %s665_s7  ;;  %p670_p6 = scmp.lt.u32.totalorder %s958_s26, %s1010_s2 }
 0x225   : > { %p671_p13 = scmp.lt.u32.totalorder %s669_s4, %s665_s7  ;;  %p673_p8 = scmp.lt.u32.totalorder %s665_s7, %s958_s26 }
 0x226   : > { %p667_p11 = pnand %p666_p9, %p1023_p0 }
 0x227   : > { %p672_p5 = por %p671_p13, %p670_p6 }
 0x228   : > { %p668_p3 = pneg %p667_p11 }
 0x229   : > { %p674_p7 = por %p673_p8, %p672_p5 }
 0x22b   : > { %p675_p4 = pnand %p674_p7, %p668_p3 }
 0x22d   : > { %678 = shalt.err (!%p675_p4)
}
 0x22e   : > { %509 = dma.vmem_to_hbm [thread:$0]  (%p1023_p0), %s960_s18, 16, %s958_s26, %s382_s27  }
 0x22f PF: > { %s406_s29 = sand.u32 1, %s717_s9   ;;  %p1024_p10 = scmp.ne.s32.totalorder %s1016_s24, 0 }
 0x230   : > { %p1025_p12 = scmp.ge.s32.totalorder %s737_s14, 2  ;;  %s407_s21 = scalar_lea.sflag [#allocation4], %s406_s29 }
 0x232   : > { %p519_p1 = pnand %p1025_p12, %p1024_p10 }
 0x234   : > { %712 = dma.done.wait (!%p519_p1), %s407_s21, 16  }
 0x235   : > { %714 = vsyncadd (!%p519_p1), %s407_s21, 4294967280  ;;  %s21_s14 = sadd.s32 1, %s737_s14   ;;  %s1026_s9 = smov %s721_s10 }
 0x236   : > { %p18_p2 = scmp.ge.s32.totalorder %s21_s14, 4   ;;  %s1027_s10 = smov %s725_s11 }
 0x237   : > { %s1028_s11 = smov %s814_s23  ;;  %s1029_s12 = smov %s733_s13 }
 0x238   : > { %s1030_s13 = smov %s1032_s17  ;;  %20 = sbr.rel (!%p18_p2) target bundleno = 8 (0x8), region = 90 }
 0x23f   :  { %411 = vsyncpa [#allocation3], 1 }
 0x240   :  { %413 = vsyncpa [#allocation3 + $0x1], 1 }
 0x241   :  { %414 = vsyncpa [#allocation6], 1 }
 0x242   :  { %416 = vsyncpa [#allocation6 + $0x1], 1 }
 0x243   :  { %417 = vsyncpa [#allocation4], 1 }
 0x244   :  { %419 = vsyncpa [#allocation4 + $0x1], 1 }

</bundles_post_ra>
